<compile_context>
chip_gen: v6e
topology: v6e:2x2x1
jax: 0.10.0
libtpu: 0.0.40
codegen_flags: <defaults>
</compile_context>

<pallas_src>
import functools
import numpy as np
import jax
import jax.numpy as jnp
from jax import lax
from jax.experimental import pallas as pl
from jax.experimental.pallas import tpu as pltpu


# ----------------------------- small helpers --------------------------------

def _round_up(n, m):
    return ((n + m - 1) // m) * m


def _pick_batch_block(B, l_out, target_lanes=1024, min_grid_steps=1):
    """Largest divisor bb of B with bb*l_out around `target_lanes` while keeping
    >= min_grid_steps grid steps.  Use min_grid_steps=2 on v7x (2 TensorCores);
    1 on single-TC v5e/v6e for maximum lane density."""
    best = 1
    for bb in range(1, B + 1):
        if B % bb:
            continue
        if bb > 1 and bb * l_out > target_lanes:
            continue
        if bb > 1 and (B // bb) < min_grid_steps:
            continue
        best = max(best, bb)
    return best


def linear_interp_matrix(l_in, l_out):
    """Dense (l_in, l_out) matrix for F.interpolate(..., mode='linear',
    align_corners=False).  Used only by the pure-JAX reference."""
    scale = l_in / l_out
    j = np.arange(l_out)
    src = scale * (j + 0.5) - 0.5
    src = np.maximum(src, 0.0)
    x0 = np.minimum(np.floor(src).astype(np.int64), l_in - 1)
    x1 = np.minimum(x0 + 1, l_in - 1)
    lam = np.clip(src - x0, 0.0, 1.0)
    m = np.zeros((l_in, l_out), dtype=np.float32)
    m[x0, j] += (1.0 - lam).astype(np.float32)
    m[x1, j] += lam.astype(np.float32)
    return jnp.asarray(m)


def linear_downsample(x, factor):
    """Exact F.interpolate(x, size=L//factor, mode='linear',
    align_corners=False) along the last axis.  Integer-divisible factors use
    strided slices + weighted add (no minor-dim gather)."""
    L = x.shape[-1]
    lo = L // factor
    if lo == L:
        return x
    if L % factor == 0:
        f = factor
        if f % 2 == 0:
            return 0.5 * (x[..., f // 2 - 1::f] + x[..., f // 2::f])
        return x[..., (f - 1) // 2::f]
    # general (non-divisible) fallback: 2-tap gather
    scale = L / lo
    src = scale * (np.arange(lo) + 0.5) - 0.5
    src = np.maximum(src, 0.0)
    x0 = np.minimum(np.floor(src).astype(np.int32), L - 1)
    x1 = np.minimum(x0 + 1, L - 1)
    lam = np.clip(src - x0, 0.0, 1.0).astype(np.float32)
    return x[..., x0] * jnp.asarray(1.0 - lam) + x[..., x1] * jnp.asarray(lam)


def orthogonal_init(key, shape):
    """Deterministic orthogonal init (PyTorch flattens trailing dims)."""
    rows = shape[0]
    cols = int(np.prod(shape[1:]))
    big, small = max(rows, cols), min(rows, cols)
    a = jax.random.normal(key, (big, small), dtype=jnp.float32)
    q, r = jnp.linalg.qr(a)
    q = q * jnp.sign(jnp.diagonal(r))
    if rows < cols:
        q = q.T
    return q.reshape(shape)


# ------------------------------- the kernel ---------------------------------

def _make_kernel(dilations, c_out8, Wp, op_dtype, ew_dtype, slope=0.2):
    """One grid step owns a (C, Wp) channel-major slab covering `bb` whole
    batch segments laid side by side along lanes (lane-padded to 128)."""
    nb = len(dilations)

    def kernel(x_ref, mask_ref, w_res_ref, b_ref, *rest):
        w_refs = rest[:nb]
        out_ref = rest[nb]

        x2 = x_ref[0]                                   # (c_in8, Wp), op_dtype

        # ---- residual branch: 1x1 conv (commuted after the downsample) ----
        r = jnp.dot(w_res_ref[...], x2, preferred_element_type=jnp.float32)
        r = r + b_ref[:, 0:1]                           # f32 bias over lanes

        # ---- main branch: stacked dilated conv blocks (matmul-then-roll) ----
        h = x2.astype(ew_dtype)
        for bi, d in enumerate(dilations):
            a = jnp.where(h >= 0, h, slope * h).astype(op_dtype)   # LeakyReLU
            # one MXU matmul for all 3 taps: (3*C_out8, Ci8) @ (Ci8, Wp)
            p = jnp.dot(w_refs[bi][...], a, preferred_element_type=jnp.float32)
            p_l = p[0:c_out8]                           # tap reading a[t-d]
            p_c = p[c_out8:2 * c_out8]                  # center tap a[t]
            p_r = p[2 * c_out8:3 * c_out8]              # tap reading a[t+d]
            m_l = mask_ref[2 * bi:2 * bi + 1, :]        # (1, Wp) f32 masks
            m_r = mask_ref[2 * bi + 1:2 * bi + 2, :]
            # roll/mask commute with the per-lane channel matmul -> exact.
            h = (m_l * pltpu.roll(p_l, d, 1)
                 + p_c
                 + m_r * pltpu.roll(p_r, Wp - d, 1)
                 + b_ref[:, bi + 1:bi + 2]).astype(ew_dtype)

        out_ref[0] = (h.astype(jnp.float32) + r).astype(out_ref.dtype)

    return kernel


# ------------------------------- the wrapper ---------------------------------

@functools.partial(
    jax.jit,
    static_argnames=("dilations", "factor", "op_dtype", "ew_dtype", "out_dtype",
                     "slope", "target_lanes", "min_grid_steps"))
def downsampling_block(x, w_res, b_res, conv_ws, conv_bs, *, dilations, factor,
                       op_dtype=jnp.float32, ew_dtype=jnp.float32,
                       out_dtype=jnp.float32, slope=0.2, target_lanes=1024,
                       min_grid_steps=1):
    """Forward pass of DownsamplingBlock.

    x:        (B, C_in, L) f32
    w_res:    (C_out, C_in)      residual 1x1 conv weight
    b_res:    (C_out,)           residual 1x1 conv bias
    conv_ws:  list of (C_out, C_in_i, 3) dilated conv weights
    conv_bs:  list of (C_out,)   dilated conv biases
    """
    B, c_in, L = x.shape
    c_out = w_res.shape[0]
    l_out = L // factor
    nb = len(dilations)
    assert len(conv_ws) == nb and len(conv_bs) == nb

    # 1) exact linear downsample once; both branches consume it.
    x_ds = linear_downsample(x, factor)                      # (B, c_in, l_out)

    # 2) channel padding: 8 for f32 operands, 16 when bf16 is involved.
    pad_c = 8
    if jnp.dtype(op_dtype).itemsize < 4 or jnp.dtype(ew_dtype).itemsize < 4:
        pad_c = 16
    c_in8 = _round_up(c_in, pad_c)
    c_out8 = _round_up(c_out, pad_c)
    x_ds = jnp.pad(x_ds, ((0, 0), (0, c_in8 - c_in), (0, 0)))

    # 3) fold batch into lanes and pad W to a 128 multiple (lane-dense stores).
    bb = _pick_batch_block(B, l_out, target_lanes, min_grid_steps)
    nblk = B // bb
    W = bb * l_out
    Wp = _round_up(W, 128)
    xk = (x_ds.reshape(nblk, bb, c_in8, l_out)
              .transpose(0, 2, 1, 3)
              .reshape(nblk, c_in8, W))
    xk = jnp.pad(xk, ((0, 0), (0, 0), (0, Wp - W))).astype(op_dtype)

    # 4) pack weights: residual (C_out8, C_in8); per-block 3-tap weights stacked
    #    along OUTPUT rows (C_out8 per tap); all biases in one f32 table.
    w_res_p = (jnp.zeros((c_out8, c_in8), jnp.float32)
                  .at[:c_out, :c_in].set(w_res).astype(op_dtype))
    in_chs = [c_in] + [c_out] * (nb - 1)
    w_stacked = []
    for w, ci in zip(conv_ws, in_chs):
        ci8 = _round_up(ci, pad_c)
        wf = jnp.zeros((3 * c_out8, ci8), jnp.float32)
        for k in range(3):                       # tap k reads a[t + (k-1)*d]
            wf = wf.at[k * c_out8:k * c_out8 + c_out, :ci].set(w[:, :, k])
        w_stacked.append(wf.astype(op_dtype))
    biases = jnp.zeros((c_out8, nb + 1), jnp.float32)
    biases = biases.at[:c_out, 0].set(b_res)
    for i, b in enumerate(conv_bs):
        biases = biases.at[:c_out, i + 1].set(b)

    # 5) precomputed per-dilation edge masks (left tap / right tap), f32.
    nb2 = _round_up(2 * nb, 8)
    lane = np.arange(Wp)
    pos = lane % l_out
    valid = lane < W
    masks_np = np.zeros((nb2, Wp), np.float32)
    for i, d in enumerate(dilations):
        masks_np[2 * i] = ((pos >= d) & valid).astype(np.float32)
        masks_np[2 * i + 1] = ((pos < l_out - d) & valid).astype(np.float32)
    masks = jnp.asarray(masks_np)

    kernel = _make_kernel(tuple(int(d) for d in dilations), c_out8, Wp,
                          op_dtype, ew_dtype, slope)

    in_specs = [
        pl.BlockSpec((1, c_in8, Wp), lambda i: (i, 0, 0)),     # x slab per block
        pl.BlockSpec((nb2, Wp), lambda i: (0, 0)),             # edge masks
        pl.BlockSpec((c_out8, c_in8), lambda i: (0, 0)),       # residual weight
        pl.BlockSpec((c_out8, nb + 1), lambda i: (0, 0)),      # all biases (f32)
    ] + [pl.BlockSpec(wf.shape, lambda i: (0, 0)) for wf in w_stacked]

    # explicit VMEM budget: never below the 32 MiB default, capped for v7x.
    op_b = jnp.dtype(op_dtype).itemsize
    est = (2 * (c_in8 * Wp * op_b + c_out8 * Wp * 4)
           + sum(w.size for w in w_stacked) * op_b
           + c_out8 * c_in8 * op_b
           + (nb2 + c_out8) * Wp * 4
           + 10 * c_out8 * Wp * 4 + 3 * c_in8 * Wp * 4)
    vmem_limit = int(min(56 * 1024 * 1024, max(32 * 1024 * 1024, est)))

    out = pl.pallas_call(
        kernel,
        out_shape=jax.ShapeDtypeStruct((nblk, c_out8, Wp), out_dtype),
        grid=(nblk,),
        in_specs=in_specs,
        out_specs=pl.BlockSpec((1, c_out8, Wp), lambda i: (i, 0, 0)),
        compiler_params=pltpu.CompilerParams(
            dimension_semantics=("parallel",),
            vmem_limit_bytes=vmem_limit),
    )(xk, masks, w_res_p, biases, *w_stacked)

    out = out[..., :W]
    out = (out.reshape(nblk, c_out8, bb, l_out)
              .transpose(0, 2, 1, 3)
              .reshape(B, c_out8, l_out))
    return out[:, :c_out, :]


# ------------------------------ pure-JAX reference ---------------------------

def ref_forward(x, w_res, b_res, conv_ws, conv_bs, dilations, factor, slope=0.2):
    """Independent reference: dense interp matrix + lax dilated convolutions."""
    L = x.shape[-1]
    l_out = L // factor
    m = linear_interp_matrix(L, l_out)
    r = jnp.einsum('oc,bcl->bol', w_res, x) + b_res.reshape(1, -1, 1)
    r = jnp.einsum('bol,lm->bom', r, m)
    h = jnp.einsum('bcl,lm->bcm', x, m)
    for w, bias, d in zip(conv_ws, conv_bs, dilations):
        a = jnp.where(h >= 0, h, slope * h)
        h = lax.conv_general_dilated(
            a, w, window_strides=(1,), padding=[(d, d)], rhs_dilation=(d,),
            dimension_numbers=('NCH', 'OIH', 'NCH'))
        h = h + bias.reshape(1, -1, 1)
    return h + r


# ------------------------------------ main -----------------------------------

if __name__ == "__main__":
    B, in_ch, out_ch, L = 2, 4, 8, 16
    factor = 2
    dilations = (1, 2, 4)

    key = jax.random.PRNGKey(0)
    keys = jax.random.split(key, 3 + 2 * len(dilations))

    x = jax.random.normal(keys[0], (B, in_ch, L), dtype=jnp.float32)

    # residual branch: Conv1d(in_ch, out_ch, kernel_size=1)
    w_res = orthogonal_init(keys[1], (out_ch, in_ch, 1)).reshape(out_ch, in_ch)
    b_res = (jax.random.uniform(keys[2], (out_ch,), minval=-1.0, maxval=1.0)
             / np.sqrt(in_ch)).astype(jnp.float32)

    # main branch conv blocks: Conv1d(ci, out_ch, 3, padding=d, dilation=d)
    in_sizes = [in_ch] + [out_ch] * (len(dilations) - 1)
    conv_ws, conv_bs = [], []
    for i, ci in enumerate(in_sizes):
        w = orthogonal_init(keys[3 + 2 * i], (out_ch, ci, 3))
        bnd = 1.0 / np.sqrt(ci * 3)
        bias = jax.random.uniform(keys[4 + 2 * i], (out_ch,),
                                  minval=-bnd, maxval=bnd).astype(jnp.float32)
        conv_ws.append(w)
        conv_bs.append(bias)

    ref = ref_forward(x, w_res, b_res, conv_ws, conv_bs, dilations, factor)

    # f32 operands (tight check; v5e-safe elementwise path).
    out = downsampling_block(x, w_res, b_res, conv_ws, conv_bs,
                             dilations=dilations, factor=factor)
    out = jax.block_until_ready(out)
    np.testing.assert_allclose(np.asarray(out), np.asarray(ref),
                               atol=1e-4, rtol=1e-4)

    # bf16 matmul operands + bf16 elementwise (v6e/v7x fast path; on v5e keep
    # ew_dtype=f32 but bf16 operands are still fine — its MXU is bf16-native).
    out_bf16 = downsampling_block(x, w_res, b_res, conv_ws, conv_bs,
                                  dilations=dilations, factor=factor,
                                  op_dtype=jnp.bfloat16, ew_dtype=jnp.bfloat16)
    out_bf16 = jax.block_until_ready(out_bf16)
    np.testing.assert_allclose(np.asarray(out_bf16), np.asarray(ref),
                               atol=2e-1, rtol=2e-1)

    print("KERNEL_OK")
</pallas_src>

<mosaic_0001>
module attributes {stable_mosaic.version = 11 : i64} {
  func.func @kernel(%arg0: i32, %arg1: memref<1x8x128xf32, #tpu.memory_space<vmem>>, %arg2: memref<8x128xf32, #tpu.memory_space<vmem>>, %arg3: memref<8x8xf32, #tpu.memory_space<vmem>>, %arg4: memref<8x4xf32, #tpu.memory_space<vmem>>, %arg5: memref<24x8xf32, #tpu.memory_space<vmem>>, %arg6: memref<24x8xf32, #tpu.memory_space<vmem>>, %arg7: memref<24x8xf32, #tpu.memory_space<vmem>>, %arg8: memref<1x8x128xf32, #tpu.memory_space<vmem>>) attributes {dimension_semantics = [#tpu.dimension_semantics<parallel>], iteration_bounds = array<i64: 1>, scalar_prefetch = 0 : i64, scratch_operands = 0 : i64, tpu.core_type = #tpu.core_type<tc>, window_params = [{transform_indices = @transform_0, window_bounds = array<i64: 1, 8, 128>}, {pipeline_mode = #tpu.pipeline_mode<synchronous>, transform_indices = @transform_1, window_bounds = array<i64: 8, 128>}, {pipeline_mode = #tpu.pipeline_mode<synchronous>, transform_indices = @transform_2, window_bounds = array<i64: 8, 8>}, {pipeline_mode = #tpu.pipeline_mode<synchronous>, transform_indices = @transform_3, window_bounds = array<i64: 8, 4>}, {pipeline_mode = #tpu.pipeline_mode<synchronous>, transform_indices = @transform_4, window_bounds = array<i64: 24, 8>}, {pipeline_mode = #tpu.pipeline_mode<synchronous>, transform_indices = @transform_5, window_bounds = array<i64: 24, 8>}, {pipeline_mode = #tpu.pipeline_mode<synchronous>, transform_indices = @transform_6, window_bounds = array<i64: 24, 8>}, {transform_indices = @transform_7, window_bounds = array<i64: 1, 8, 128>}]} {
    %c0 = arith.constant 0 : index
    %c0_0 = arith.constant 0 : index
    %c0_1 = arith.constant 0 : index
    %0 = vector.load %arg1[%c0, %c0_0, %c0_1] : memref<1x8x128xf32, #tpu.memory_space<vmem>>, vector<1x8x128xf32>
    %1 = vector.shape_cast %0 : vector<1x8x128xf32> to vector<8x128xf32>
    %c0_2 = arith.constant 0 : index
    %c0_3 = arith.constant 0 : index
    %2 = vector.load %arg3[%c0_2, %c0_3] : memref<8x8xf32, #tpu.memory_space<vmem>>, vector<8x8xf32>
    %cst = arith.constant dense<0.000000e+00> : vector<8x128xf32>
    %3 = tpu.matmul %2, %1, %cst {dimension_numbers = #tpu.dot_dimension_numbers<[1], [0], [0], [1], [0, 0, 1, 1], [], []>} : vector<8x8xf32>, vector<8x128xf32>, vector<8x128xf32> -> vector<8x128xf32>
    %c0_4 = arith.constant 0 : index
    %c0_5 = arith.constant 0 : index
    %4 = vector.load %arg4[%c0_4, %c0_5] : memref<8x4xf32, #tpu.memory_space<vmem>>, vector<8x1xf32>
    %5 = vector.broadcast %4 : vector<8x1xf32> to vector<8x128xf32>
    %6 = arith.addf %3, %5 : vector<8x128xf32>
    %cst_6 = arith.constant 0.000000e+00 : f32
    %7 = vector.broadcast %cst_6 : f32 to vector<8x128xf32>
    %8 = arith.cmpf oge, %1, %7 : vector<8x128xf32>
    %cst_7 = arith.constant 2.000000e-01 : f32
    %9 = vector.broadcast %cst_7 : f32 to vector<8x128xf32>
    %10 = arith.mulf %9, %1 : vector<8x128xf32>
    %11 = arith.select %8, %1, %10 : vector<8x128xi1>, vector<8x128xf32>
    %c0_8 = arith.constant 0 : index
    %c0_9 = arith.constant 0 : index
    %12 = vector.load %arg5[%c0_8, %c0_9] : memref<24x8xf32, #tpu.memory_space<vmem>>, vector<24x8xf32>
    %cst_10 = arith.constant dense<0.000000e+00> : vector<24x128xf32>
    %13 = tpu.matmul %12, %11, %cst_10 {dimension_numbers = #tpu.dot_dimension_numbers<[1], [0], [0], [1], [0, 0, 1, 1], [], []>} : vector<24x8xf32>, vector<8x128xf32>, vector<24x128xf32> -> vector<24x128xf32>
    %14 = vector.extract_strided_slice %13 {offsets = [0, 0], sizes = [8, 128], strides = [1, 1]} : vector<24x128xf32> to vector<8x128xf32>
    %15 = vector.extract_strided_slice %13 {offsets = [8, 0], sizes = [8, 128], strides = [1, 1]} : vector<24x128xf32> to vector<8x128xf32>
    %16 = vector.extract_strided_slice %13 {offsets = [16, 0], sizes = [8, 128], strides = [1, 1]} : vector<24x128xf32> to vector<8x128xf32>
    %c0_11 = arith.constant 0 : index
    %c0_12 = arith.constant 0 : index
    %17 = vector.load %arg2[%c0_11, %c0_12] : memref<8x128xf32, #tpu.memory_space<vmem>>, vector<1x128xf32>
    %c1 = arith.constant 1 : index
    %c0_13 = arith.constant 0 : index
    %18 = vector.load %arg2[%c1, %c0_13] : memref<8x128xf32, #tpu.memory_space<vmem>>, vector<1x128xf32>
    %c1_i32 = arith.constant 1 : i32
    %19 = tpu.dynamic_rotate %14 by %c1_i32 dim 1 : vector<8x128xf32>, i32 -> vector<8x128xf32>
    %20 = vector.broadcast %17 : vector<1x128xf32> to vector<8x128xf32>
    %21 = arith.mulf %20, %19 : vector<8x128xf32>
    %22 = arith.addf %21, %15 : vector<8x128xf32>
    %c127_i32 = arith.constant 127 : i32
    %23 = tpu.dynamic_rotate %16 by %c127_i32 dim 1 : vector<8x128xf32>, i32 -> vector<8x128xf32>
    %24 = vector.broadcast %18 : vector<1x128xf32> to vector<8x128xf32>
    %25 = arith.mulf %24, %23 : vector<8x128xf32>
    %26 = arith.addf %22, %25 : vector<8x128xf32>
    %c0_14 = arith.constant 0 : index
    %c1_15 = arith.constant 1 : index
    %27 = vector.load %arg4[%c0_14, %c1_15] : memref<8x4xf32, #tpu.memory_space<vmem>>, vector<8x1xf32>
    %28 = vector.broadcast %27 : vector<8x1xf32> to vector<8x128xf32>
    %29 = arith.addf %26, %28 : vector<8x128xf32>
    %cst_16 = arith.constant 0.000000e+00 : f32
    %30 = vector.broadcast %cst_16 : f32 to vector<8x128xf32>
    %31 = arith.cmpf oge, %29, %30 : vector<8x128xf32>
    %cst_17 = arith.constant 2.000000e-01 : f32
    %32 = vector.broadcast %cst_17 : f32 to vector<8x128xf32>
    %33 = arith.mulf %32, %29 : vector<8x128xf32>
    %34 = arith.select %31, %29, %33 : vector<8x128xi1>, vector<8x128xf32>
    %c0_18 = arith.constant 0 : index
    %c0_19 = arith.constant 0 : index
    %35 = vector.load %arg6[%c0_18, %c0_19] : memref<24x8xf32, #tpu.memory_space<vmem>>, vector<24x8xf32>
    %cst_20 = arith.constant dense<0.000000e+00> : vector<24x128xf32>
    %36 = tpu.matmul %35, %34, %cst_20 {dimension_numbers = #tpu.dot_dimension_numbers<[1], [0], [0], [1], [0, 0, 1, 1], [], []>} : vector<24x8xf32>, vector<8x128xf32>, vector<24x128xf32> -> vector<24x128xf32>
    %37 = vector.extract_strided_slice %36 {offsets = [0, 0], sizes = [8, 128], strides = [1, 1]} : vector<24x128xf32> to vector<8x128xf32>
    %38 = vector.extract_strided_slice %36 {offsets = [8, 0], sizes = [8, 128], strides = [1, 1]} : vector<24x128xf32> to vector<8x128xf32>
    %39 = vector.extract_strided_slice %36 {offsets = [16, 0], sizes = [8, 128], strides = [1, 1]} : vector<24x128xf32> to vector<8x128xf32>
    %c2 = arith.constant 2 : index
    %c0_21 = arith.constant 0 : index
    %40 = vector.load %arg2[%c2, %c0_21] : memref<8x128xf32, #tpu.memory_space<vmem>>, vector<1x128xf32>
    %c3 = arith.constant 3 : index
    %c0_22 = arith.constant 0 : index
    %41 = vector.load %arg2[%c3, %c0_22] : memref<8x128xf32, #tpu.memory_space<vmem>>, vector<1x128xf32>
    %c2_i32 = arith.constant 2 : i32
    %42 = tpu.dynamic_rotate %37 by %c2_i32 dim 1 : vector<8x128xf32>, i32 -> vector<8x128xf32>
    %43 = vector.broadcast %40 : vector<1x128xf32> to vector<8x128xf32>
    %44 = arith.mulf %43, %42 : vector<8x128xf32>
    %45 = arith.addf %44, %38 : vector<8x128xf32>
    %c126_i32 = arith.constant 126 : i32
    %46 = tpu.dynamic_rotate %39 by %c126_i32 dim 1 : vector<8x128xf32>, i32 -> vector<8x128xf32>
    %47 = vector.broadcast %41 : vector<1x128xf32> to vector<8x128xf32>
    %48 = arith.mulf %47, %46 : vector<8x128xf32>
    %49 = arith.addf %45, %48 : vector<8x128xf32>
    %c0_23 = arith.constant 0 : index
    %c2_24 = arith.constant 2 : index
    %50 = vector.load %arg4[%c0_23, %c2_24] : memref<8x4xf32, #tpu.memory_space<vmem>>, vector<8x1xf32>
    %51 = vector.broadcast %50 : vector<8x1xf32> to vector<8x128xf32>
    %52 = arith.addf %49, %51 : vector<8x128xf32>
    %cst_25 = arith.constant 0.000000e+00 : f32
    %53 = vector.broadcast %cst_25 : f32 to vector<8x128xf32>
    %54 = arith.cmpf oge, %52, %53 : vector<8x128xf32>
    %cst_26 = arith.constant 2.000000e-01 : f32
    %55 = vector.broadcast %cst_26 : f32 to vector<8x128xf32>
    %56 = arith.mulf %55, %52 : vector<8x128xf32>
    %57 = arith.select %54, %52, %56 : vector<8x128xi1>, vector<8x128xf32>
    %c0_27 = arith.constant 0 : index
    %c0_28 = arith.constant 0 : index
    %58 = vector.load %arg7[%c0_27, %c0_28] : memref<24x8xf32, #tpu.memory_space<vmem>>, vector<24x8xf32>
    %cst_29 = arith.constant dense<0.000000e+00> : vector<24x128xf32>
    %59 = tpu.matmul %58, %57, %cst_29 {dimension_numbers = #tpu.dot_dimension_numbers<[1], [0], [0], [1], [0, 0, 1, 1], [], []>} : vector<24x8xf32>, vector<8x128xf32>, vector<24x128xf32> -> vector<24x128xf32>
    %60 = vector.extract_strided_slice %59 {offsets = [0, 0], sizes = [8, 128], strides = [1, 1]} : vector<24x128xf32> to vector<8x128xf32>
    %61 = vector.extract_strided_slice %59 {offsets = [8, 0], sizes = [8, 128], strides = [1, 1]} : vector<24x128xf32> to vector<8x128xf32>
    %62 = vector.extract_strided_slice %59 {offsets = [16, 0], sizes = [8, 128], strides = [1, 1]} : vector<24x128xf32> to vector<8x128xf32>
    %c4 = arith.constant 4 : index
    %c0_30 = arith.constant 0 : index
    %63 = vector.load %arg2[%c4, %c0_30] : memref<8x128xf32, #tpu.memory_space<vmem>>, vector<1x128xf32>
    %c5 = arith.constant 5 : index
    %c0_31 = arith.constant 0 : index
    %64 = vector.load %arg2[%c5, %c0_31] : memref<8x128xf32, #tpu.memory_space<vmem>>, vector<1x128xf32>
    %c4_i32 = arith.constant 4 : i32
    %65 = tpu.dynamic_rotate %60 by %c4_i32 dim 1 : vector<8x128xf32>, i32 -> vector<8x128xf32>
    %66 = vector.broadcast %63 : vector<1x128xf32> to vector<8x128xf32>
    %67 = arith.mulf %66, %65 : vector<8x128xf32>
    %68 = arith.addf %67, %61 : vector<8x128xf32>
    %c124_i32 = arith.constant 124 : i32
    %69 = tpu.dynamic_rotate %62 by %c124_i32 dim 1 : vector<8x128xf32>, i32 -> vector<8x128xf32>
    %70 = vector.broadcast %64 : vector<1x128xf32> to vector<8x128xf32>
    %71 = arith.mulf %70, %69 : vector<8x128xf32>
    %72 = arith.addf %68, %71 : vector<8x128xf32>
    %c0_32 = arith.constant 0 : index
    %c3_33 = arith.constant 3 : index
    %73 = vector.load %arg4[%c0_32, %c3_33] : memref<8x4xf32, #tpu.memory_space<vmem>>, vector<8x1xf32>
    %74 = vector.broadcast %73 : vector<8x1xf32> to vector<8x128xf32>
    %75 = arith.addf %72, %74 : vector<8x128xf32>
    %76 = arith.addf %75, %6 : vector<8x128xf32>
    %c0_34 = arith.constant 0 : index
    %c0_35 = arith.constant 0 : index
    %c0_36 = arith.constant 0 : index
    %77 = vector.load %arg8[%c0_34, %c0_35, %c0_36] : memref<1x8x128xf32, #tpu.memory_space<vmem>>, vector<1x8x128xf32>
    %78 = vector.shape_cast %77 : vector<1x8x128xf32> to vector<8x128xf32>
    %79 = vector.shape_cast %76 : vector<8x128xf32> to vector<1x8x128xf32>
    tpu.vector_store %arg8[%c0_34, %c0_35, %c0_36], %79 {strides = array<i32>} : memref<1x8x128xf32, #tpu.memory_space<vmem>>, vector<1x8x128xf32>,
    return
  }
  func.func @transform_0(%arg0: i32) -> (i32, i32, i32) {
    %c0_i32 = arith.constant 0 : i32
    %c0_i32_0 = arith.constant 0 : i32
    %c0_i32_1 = arith.constant 0 : i32
    return %arg0, %c0_i32, %c0_i32_0 : i32, i32, i32
  }
  func.func @transform_1(%arg0: i32) -> (i32, i32) {
    %c0_i32 = arith.constant 0 : i32
    %c0_i32_0 = arith.constant 0 : i32
    %c0_i32_1 = arith.constant 0 : i32
    return %c0_i32, %c0_i32_0 : i32, i32
  }
  func.func @transform_2(%arg0: i32) -> (i32, i32) {
    %c0_i32 = arith.constant 0 : i32
    %c0_i32_0 = arith.constant 0 : i32
    %c0_i32_1 = arith.constant 0 : i32
    return %c0_i32, %c0_i32_0 : i32, i32
  }
  func.func @transform_3(%arg0: i32) -> (i32, i32) {
    %c0_i32 = arith.constant 0 : i32
    %c0_i32_0 = arith.constant 0 : i32
    %c0_i32_1 = arith.constant 0 : i32
    return %c0_i32, %c0_i32_0 : i32, i32
  }
  func.func @transform_4(%arg0: i32) -> (i32, i32) {
    %c0_i32 = arith.constant 0 : i32
    %c0_i32_0 = arith.constant 0 : i32
    %c0_i32_1 = arith.constant 0 : i32
    return %c0_i32, %c0_i32_0 : i32, i32
  }
  func.func @transform_5(%arg0: i32) -> (i32, i32) {
    %c0_i32 = arith.constant 0 : i32
    %c0_i32_0 = arith.constant 0 : i32
    %c0_i32_1 = arith.constant 0 : i32
    return %c0_i32, %c0_i32_0 : i32, i32
  }
  func.func @transform_6(%arg0: i32) -> (i32, i32) {
    %c0_i32 = arith.constant 0 : i32
    %c0_i32_0 = arith.constant 0 : i32
    %c0_i32_1 = arith.constant 0 : i32
    return %c0_i32, %c0_i32_0 : i32, i32
  }
  func.func @transform_7(%arg0: i32) -> (i32, i32, i32) {
    %c0_i32 = arith.constant 0 : i32
    %c0_i32_0 = arith.constant 0 : i32
    %c0_i32_1 = arith.constant 0 : i32
    return %arg0, %c0_i32, %c0_i32_0 : i32, i32, i32
  }
}

</mosaic_0001>

<bundles_post_ra>
// kernel: downsampling_block.1
= control target key start
LH: loop header
LB: loop body
LE: loop exit
PB: predicated region body
PF: predicated region fallthrough
CT: control target
= control target key end

     0   :  { %vm34_vm0 = vcmask 64512   ;;  %v555_v0 = vmov 0.0   ;;  %vm556_vm1 = vmmov 0   ;;  %v557_v8 = vmov 1   ;;  %s558_s9 = smov 1   ;;  %s559_s11 = smov 127   ;;  %s702_s0 = inlined_call_operand.vmem [shape: f32[1,8,128], index: 0, kind: input, shape index: {}]   ;;  %s703_s2 = inlined_call_operand.vmem [shape: f32[8,8], index: 2, kind: input, shape index: {}]   ;;  %s704_s4 = inlined_call_operand.vmem [shape: f32[24,8], index: 4, kind: input, shape index: {}]   ;;  %s705_s3 = inlined_call_operand.vmem [shape: f32[8,4], index: 3, kind: input, shape index: {}]   ;;  %s706_s1 = inlined_call_operand.vmem [shape: f32[8,128], index: 1, kind: input, shape index: {}]   ;;  %s707_s5 = inlined_call_operand.vmem [shape: f32[24,8], index: 5, kind: input, shape index: {}]   ;;  %s708_s6 = inlined_call_operand.vmem [shape: f32[24,8], index: 6, kind: input, shape index: {}]   ;;  %s709_s7 = inlined_call_operand.vmem [shape: f32[1,8,128], index: 7, kind: output, shape index: {}]  }
   0x1   :  { %498 = vmatprep.subr.mxu0 %v555_v0  ;;  %v26_v1 = vld [vmem:[%s702_s0] sm:$0xff]  ;;  %500 = vmatprep.mubr.msk.f32.mxu0 %vm556_vm1, %v555_v0  ;;  %v112_v4 = vld [vmem:[%s704_s4 + $0x8] sm:$0xff]  ;;  %v113_v7 = vld [vmem:[%s704_s4 + $0x10] sm:$0xff]  ;;  %v560_v33 = vmov 2   ;;  %v561_v34 = vmov 0   ;;  %s562_s21 = smov 2  }
   0x2   :  { %v27_v2 = vld [vmem:[%s703_s2] sm:$0xff]  ;;  %499 = vmatpush3.msra.mxu0 %v26_v1  ;;  %536 = vmatprep.subr.mxu1 %v555_v0  ;;  %vm108_vm2 = vcmp.ge.f32.partialorder %v26_v1, 0.0  ;;  %v109_v3 = vmul.f32 0.2, %v26_v1  ;;  %v230_v31 = vld [vmem:[%s707_s5 + $0x8] sm:$0xff]  ;;  %v231_v32 = vld [vmem:[%s707_s5 + $0x10] sm:$0xff] }
   0x3   :  { %501 = vmatmul.mubr.msk.f32.vlgmr.msra.gmra.mxu0 %vm34_vm0, %v27_v2  ;;  %503 = vmatprep.subr.mxu0 %v555_v0  ;;  %v111_v6 = vld [vmem:[%s704_s4] sm:$0xff]  ;;  %s563_s22 = smov 126   ;;  %v564_v41 = vmov 3   ;;  %v348_v55 = vld [vmem:[%s708_s6 + $0x8] sm:$0xff]  ;;  %v349_v56 = vld [vmem:[%s708_s6 + $0x10] sm:$0xff]  ;;  %s565_s30 = smov 4  }
   0x4   :  { %v110_v5 = vsel %vm108_vm2, %v26_v1, %v109_v3  ;;  %508 = vmatprep.mubr.msk.f32.mxu1 %vm556_vm1, %v555_v0  ;;  %505 = vmatprep.mubr.msk.f32.mxu0 %vm556_vm1, %v555_v0  ;;  %v28_v15 = vld [vmem:[%s705_s3] sm:$0xff]  ;;  %s566_s8 = smov 124  }
   0x5   :  { %537 = vmatpush3.msra.mxu1 %v110_v5  ;;  %504 = vmatpush3.msra.mxu0 %v110_v5  ;;  %v472_v18 = vld [vmem:[%s706_s1] ss:$0 sm:$0xff]  ;;  %v473_v21 = vld [vmem:[%s706_s1 + $0x1] ss:$0 sm:$0xff]  ;;  %v477_v42 = vld [vmem:[%s706_s1 + $0x2] ss:$0 sm:$0xff] }
   0x6   :  { %509 = vmatmul.mubr.msk.f32.vlgmr.msra.gmra.mxu1 %vm34_vm0, %v112_v4  ;;  %514 = vmatprep.subr.mxu0 %v555_v0  ;;  %v229_v29 = vld [vmem:[%s707_s5] sm:$0xff] }
   0x7   :  { %506 = vmatmul.mubr.msk.f32.vlgmr.msra.gmra.mxu0 %vm34_vm0, %v111_v6  ;;  %511 = vmatprep.mubr.msk.f32.mxu1 %vm556_vm1, %v555_v0  ;;  %v478_v45 = vld [vmem:[%s706_s1 + $0x3] ss:$0 sm:$0xff]  ;;  %v483_v3 = vld [vmem:[%s706_s1 + $0x5] ss:$0 sm:$0xff] }
   0x8   :  { %516 = vmatprep.mubr.msk.f32.mxu0 %vm556_vm1, %v555_v0  ;;  %525 = vmatprep.subr.mxu1 %v555_v0  ;;  %v347_v53 = vld [vmem:[%s708_s6] sm:$0xff] }
   0x9   :  { %550 = vset.pattern.permute.xlu0 %v557_v8  ;;  %551 = vset.pattern.permute.xlu1 %v560_v33 }
   0xa   :  { %512 = vmatmul.mubr.msk.f32.gmra.mxu1 %vm34_vm0, %v113_v7 }
   0xb   :  { %527 = vmatprep.mubr.msk.f32.mxu1 %vm556_vm1, %v555_v0 }
  0xc3   :  { %v643_v9 = vpop.f32.mrf.mxu0 }
  0xc5   :  { %v502_v10 = vpop.f32.mrf.mxu0 }
  0xc6   :  { %v194_v11 = vpop.f32.mrf.mxu1 }
  0xc7   :  { %v189_v12 = vpop.f32.mrf.mxu0 }
  0xc8   :  { %v510_v13 = vpop.f32.mrf.mxu1  ;;  %205 = vrot.lane.b32.xlu0 %v189_v12, %s558_s9 }
  0xc9   :  { %v507_v14 = vpop.f32.mrf.mxu0 }
  0xca   :  { %v199_v16 = vpop.f32.mrf.mxu1 }
  0xcb   :  { %213 = vrot.lane.b32.xlu1 %v199_v16, %s559_s11 }
  0xcc   :  { %222 = vperm.xlu0 %550, %v28_v15   ;;  %v513_v17 = vpop.f32.mrf.mxu1 }
  0xd0   :  { %552 = vset.pattern.permute.xlu0 %v561_v34 }
 0x13a   :  { %v206_v19 = vpop.permute.xlu0 %205 }
 0x13b   :  { %v211_v20 = vmul.f32 %v472_v18, %v206_v19 }
 0x13d   :  { %v214_v22 = vpop.permute.xlu1 %213  ;;  %v212_v23 = vadd.f32 %v211_v20, %v194_v11 }
 0x13e   :  { %v219_v24 = vmul.f32 %v473_v21, %v214_v22 }
 0x140   :  { %v220_v25 = vadd.f32 %v219_v24, %v212_v23 }
 0x147   :  { %v223_v26 = vpop.permute.xlu0 %222 }
 0x148   :  { %v225_v27 = vadd.f32 %v223_v26, %v220_v25 }
 0x14a   :  { %vm226_vm3 = vcmp.ge.f32.partialorder %v225_v27, 0.0  ;;  %v227_v28 = vmul.f32 0.2, %v225_v27 }
 0x14c   :  { %v228_v30 = vsel %vm226_vm3, %v225_v27, %v227_v28 }
 0x14d   :  { %515 = vmatpush3.msra.mxu0 %v228_v30 }
 0x14e   :  { %517 = vmatmul.mubr.msk.f32.vlgmr.msra.gmra.mxu0 %vm34_vm0, %v229_v29 }
 0x14f   :  { %519 = vmatprep.mubr.msk.f32.mxu0 %vm556_vm1, %v555_v0 }
 0x152   :  { %520 = vmatmul.mubr.msk.f32.gmra.mxu0 %vm34_vm0, %v230_v31 }
 0x153   :  { %522 = vmatprep.mubr.msk.f32.mxu0 %vm556_vm1, %v555_v0 }
 0x156   :  { %523 = vmatmul.mubr.msk.f32.gmra.mxu0 %vm34_vm0, %v231_v32 }
 0x20e   :  { %v307_v35 = vpop.f32.mrf.mxu0 }
 0x20f   :  { %323 = vrot.lane.b32.xlu1 %v307_v35, %s562_s21 }
 0x210   :  { %v518_v36 = vpop.f32.mrf.mxu0 }
 0x212   :  { %v312_v37 = vpop.f32.mrf.mxu0 }
 0x213   :  { %340 = vperm.xlu1 %551, %v28_v15  }
 0x214   :  { %v521_v38 = vpop.f32.mrf.mxu0 }
 0x216   :  { %v317_v39 = vpop.f32.mrf.mxu0 }
 0x217   :  { %331 = vrot.lane.b32.xlu0 %v317_v39, %s563_s22  ;;  %553 = vset.pattern.permute.xlu1 %v564_v41 }
 0x218   :  { %v524_v40 = vpop.f32.mrf.mxu0  ;;  %458 = vperm.xlu1 %553, %v28_v15  }
 0x21b   :  { %31 = vperm.xlu0 %552, %v28_v15  }
 0x21f   :  { %554 = vset.pattern.permute.xlu0 %v564_v41 }
 0x281   :  { %v324_v43 = vpop.permute.xlu1 %323 }
 0x282   :  { %v329_v44 = vmul.f32 %v477_v42, %v324_v43 }
 0x284   :  { %v330_v47 = vadd.f32 %v329_v44, %v312_v37 }
 0x289   :  { %v332_v46 = vpop.permute.xlu0 %331 }
 0x28a   :  { %v337_v48 = vmul.f32 %v478_v45, %v332_v46 }
 0x28c   :  { %v338_v49 = vadd.f32 %v337_v48, %v330_v47 }
 0x28e   :  { %v341_v50 = vpop.permute.xlu1 %340 }
 0x28f   :  { %v343_v51 = vadd.f32 %v341_v50, %v338_v49 }
 0x291   :  { %vm344_vm4 = vcmp.ge.f32.partialorder %v343_v51, 0.0  ;;  %v345_v52 = vmul.f32 0.2, %v343_v51 }
 0x293   :  { %v346_v54 = vsel %vm344_vm4, %v343_v51, %v345_v52  ;;  %v459_v63 = vpop.permute.xlu1 %458 }
 0x294   :  { %526 = vmatpush3.msra.mxu1 %v346_v54 }
 0x295   :  { %528 = vmatmul.mubr.msk.f32.vlgmr.msra.gmra.mxu1 %vm34_vm0, %v347_v53 }
 0x296   :  { %530 = vmatprep.mubr.msk.f32.mxu1 %vm556_vm1, %v555_v0  ;;  %v32_v7 = vpop.permute.xlu0 %31 }
 0x297   :  { %v105_v10 = vadd.f32 %v643_v9, %v32_v7 }
 0x299   :  { %531 = vmatmul.mubr.msk.f32.gmra.mxu1 %vm34_vm0, %v348_v55 }
 0x29a   :  { %533 = vmatprep.mubr.msk.f32.mxu1 %vm556_vm1, %v555_v0  ;;  %v482_v0 = vld [vmem:[%s706_s1 + $0x4] ss:$0 sm:$0xff] }
 0x29d   :  { %534 = vmatmul.mubr.msk.f32.gmra.mxu1 %vm34_vm0, %v349_v56 }
 0x355   :  { %v425_v57 = vpop.f32.mrf.mxu1 }
 0x356   :  { %441 = vrot.lane.b32.xlu1 %v425_v57, %s565_s30 }
 0x357   :  { %v529_v58 = vpop.f32.mrf.mxu1 }
 0x359   :  { %v430_v59 = vpop.f32.mrf.mxu1 }
 0x35b   :  { %v532_v60 = vpop.f32.mrf.mxu1 }
 0x35d   :  { %v435_v61 = vpop.f32.mrf.mxu1 }
 0x35e   :  { %449 = vrot.lane.b32.xlu1 %v435_v61, %s566_s8 }
 0x35f   :  { %v535_v62 = vpop.f32.mrf.mxu1 }
 0x3c8   :  { %v442_v1 = vpop.permute.xlu1 %441 }
 0x3c9   :  { %v447_v2 = vmul.f32 %v482_v0, %v442_v1 }
 0x3cb   :  { %v448_v5 = vadd.f32 %v447_v2, %v430_v59 }
 0x3d0   :  { %v450_v4 = vpop.permute.xlu1 %449 }
 0x3d1   :  { %v455_v6 = vmul.f32 %v483_v3, %v450_v4 }
 0x3d3   :  { %v456_v8 = vadd.f32 %v455_v6, %v448_v5 }
 0x3d5   :  { %v461_v11 = vadd.f32 %v459_v63, %v456_v8 }
 0x3d7   :  { %v462_v12 = vadd.f32 %v461_v11, %v105_v10 }
 0x3d9   :  { %463 = vst [vmem:[%s709_s7] sm:$0xff] %v462_v12 }

</bundles_post_ra>
